<compile_context>
chip_gen: v5e
topology: v5e:2x2
jax: 0.10.0
libtpu: 0.0.40
codegen_flags: <defaults>
</compile_context>

<pallas_src>
import functools
import math

import jax
import jax.numpy as jnp
from jax.experimental import pallas as pl
from jax.experimental.pallas import tpu as pltpu


def _round_up(n, m):
    return pl.cdiv(n, m) * m


# --------------------------------------------------------------------------- #
# Kernel
# --------------------------------------------------------------------------- #
def _res_net_kernel(x_ref, wf_ref, wt_ref, b_ref, o_ref, *, out_pad, n_out):
    """One batch tile of the residual net.

    x_ref : (TM, nx)
    wf_ref: (nx, out_pad + H)   = [ w_lin_pad | w0 ]
    wt_ref: (H , out_pad + H)   = [ w2_pad   | w1 ]
    b_ref : (2 , out_pad + H)   = [[b_lin+b2 pad | b0], [0 | b1]]   (f32)
    o_ref : (TM, n_out)         narrow (un-padded) output block
    """
    x = x_ref[...]

    # Fused first MXU pass: [ lin_pad | h1_pre ] = x @ [w_lin_pad | w0] + biases.
    t = jnp.dot(x, wf_ref[...], preferred_element_type=jnp.float32) + b_ref[0:1, :]
    lin = t[:, :out_pad]                      # skip path (already has b_lin + b2)
    h = jnp.tanh(t[:, out_pad:])              # hidden layer 0 activation (f32)

    # Hidden layer 1 (f32 accumulate, f32 bias + tanh).
    h = jnp.tanh(
        jnp.dot(h.astype(wt_ref.dtype), wt_ref[:, out_pad:],
                preferred_element_type=jnp.float32)
        + b_ref[1:2, out_pad:])

    # Output layer (matmul on the lane-aligned padded width) + residual skip.
    nl = jnp.dot(h.astype(wt_ref.dtype), wt_ref[:, :out_pad],
                 preferred_element_type=jnp.float32)
    y = lin + nl
    # Store only the real n_out columns (value-level slice; narrow store).
    o_ref[...] = y[:, :n_out].astype(o_ref.dtype)


# --------------------------------------------------------------------------- #
# Host-side parameter packing (done once; pure plumbing)
# --------------------------------------------------------------------------- #
def pack_params(p, n_out, *, compute_dtype=jnp.bfloat16):
    """Pack the 8 per-layer tensors into 3 slabs the kernel consumes.

    compute_dtype: storage dtype for x/W slabs (bf16 default; accumulation,
    bias add and tanh stay f32 inside the kernel). Use jnp.float32 for
    reference-tight numerics.
    """
    w_lin, b_lin = p["w_lin"], p["b_lin"]
    w0, b0 = p["w0"], p["b0"]
    w1, b1 = p["w1"], p["b1"]
    w2, b2 = p["w2"], p["b2"]
    out_pad = _round_up(max(1, n_out), 128)

    def pad_cols(a, width):
        return jnp.pad(a, ((0, 0), (0, width - a.shape[1])))

    w_first = jnp.concatenate([pad_cols(w_lin, out_pad), w0], axis=1)
    w_tail = jnp.concatenate([pad_cols(w2, out_pad), w1], axis=1)
    bias_row0 = jnp.concatenate([pad_cols(b_lin + b2, out_pad), b0], axis=1)
    bias_row1 = jnp.concatenate([jnp.zeros((1, out_pad), jnp.float32), b1], axis=1)
    bias = jnp.concatenate([bias_row0, bias_row1], axis=0).astype(jnp.float32)

    return dict(w_first=w_first.astype(compute_dtype),
                w_tail=w_tail.astype(compute_dtype),
                bias=bias)


# --------------------------------------------------------------------------- #
# Wrapper
# --------------------------------------------------------------------------- #
def default_output_net_forward(x, packed, ny_shape):
    """x: (B, nx).  Returns (B, *ny_shape) matching the PyTorch forward."""
    B, nx = x.shape
    ny_shape = tuple(ny_shape)
    n_out = max(1, math.prod(ny_shape))          # static, no device round-trip
    out_pad = _round_up(n_out, 128)

    wf, wt, bias = packed["w_first"], packed["w_tail"], packed["bias"]
    hidden = wf.shape[1] - out_pad
    x = x.astype(wf.dtype)

    # Batch tiling: big sublane-aligned row tiles; aim for >= 2 grid steps
    # whenever B > 8 so v7x's two TensorCores both get work (harmless on
    # single-TC v5e/v6e).  Cap 2048 rows -> double-buffered VMEM stays tiny.
    TM_MAX = 2048
    tm = max(8, min(TM_MAX, _round_up(pl.cdiv(B, 2), 8)))
    b_padded = _round_up(B, tm)
    if b_padded != B:
        x = jnp.pad(x, ((0, b_padded - B), (0, 0)))
    grid = (b_padded // tm,)

    itemsize = jnp.dtype(wf.dtype).itemsize
    cost = pl.CostEstimate(
        flops=2 * b_padded * (nx * (out_pad + hidden)
                              + hidden * hidden
                              + hidden * out_pad),
        transcendentals=2 * b_padded * hidden,
        bytes_accessed=(b_padded * nx * itemsize                    # x stream
                        + (nx + hidden) * (out_pad + hidden) * itemsize  # weights
                        + 2 * (out_pad + hidden) * 4                # biases (f32)
                        + b_padded * n_out * 4),                    # narrow output
    )

    out = pl.pallas_call(
        functools.partial(_res_net_kernel, out_pad=out_pad, n_out=n_out),
        out_shape=jax.ShapeDtypeStruct((b_padded, n_out), jnp.float32),
        grid=grid,
        in_specs=[
            pl.BlockSpec((tm, nx), lambda i: (i, 0)),                    # x tile
            pl.BlockSpec((nx, out_pad + hidden), lambda i: (0, 0)),      # W_first
            pl.BlockSpec((hidden, out_pad + hidden), lambda i: (0, 0)),  # W_tail
            pl.BlockSpec((2, out_pad + hidden), lambda i: (0, 0)),       # biases
        ],
        out_specs=pl.BlockSpec((tm, n_out), lambda i: (i, 0)),  # narrow output
        compiler_params=pltpu.CompilerParams(
            dimension_semantics=("parallel",),       # megacore sharding on v7x
            vmem_limit_bytes=32 * 1024 * 1024,       # safe on v5e/v6e/v7x
        ),
        cost_estimate=cost,
    )(x, wf, wt, bias)

    if b_padded != B:
        out = out[:B]
    # .view(batch, *ny) -- pure reshape glue, outside the kernel.
    return out.reshape((B,) + ny_shape)


# --------------------------------------------------------------------------- #
# Init + pure-JAX reference
# --------------------------------------------------------------------------- #
def init_params(key, nx, n_out, hidden):
    """PyTorch-Linear-shaped params, stored transposed as (in, out)."""
    def linear(k, n_in, n_o):
        kw, kb = jax.random.split(k)
        bound = 1.0 / math.sqrt(n_in)
        w = jax.random.uniform(kw, (n_in, n_o), jnp.float32, -bound, bound)
        b = jax.random.uniform(kb, (1, n_o), jnp.float32, -bound, bound)
        return w, b

    k_lin, k0, k1, k2 = jax.random.split(key, 4)
    w_lin, b_lin = linear(k_lin, nx, n_out)   # net_lin: Linear(nx, ny)
    w0, b0 = linear(k0, nx, hidden)           # ffn layer 0
    w1, b1 = linear(k1, hidden, hidden)       # ffn layer 1
    w2, b2 = linear(k2, hidden, n_out)        # ffn output layer
    return dict(w_lin=w_lin, b_lin=b_lin, w0=w0, b0=b0,
                w1=w1, b1=b1, w2=w2, b2=b2)


def reference_forward(x, p, ny_shape):
    lin = x @ p["w_lin"] + p["b_lin"]
    h = jnp.tanh(x @ p["w0"] + p["b0"])
    h = jnp.tanh(h @ p["w1"] + p["b1"])
    nl = h @ p["w2"] + p["b2"]
    return (lin + nl).reshape((x.shape[0],) + tuple(ny_shape))


# --------------------------------------------------------------------------- #
# Demo / correctness check
# --------------------------------------------------------------------------- #
if __name__ == "__main__":
    # Shapes consistent with the module defaults: nx=32, ny=(4,), hidden=64.
    nx, hidden = 32, 64
    ny = (4,)
    n_out = math.prod(ny)

    key = jax.random.PRNGKey(0)
    k_x, k_p, k_x2 = jax.random.split(key, 3)
    params = init_params(k_p, nx, n_out, hidden)

    packed_f32 = pack_params(params, n_out, compute_dtype=jnp.float32)
    packed_bf16 = pack_params(params, n_out)   # bf16 storage (default, all chips)

    # Small batch (single-tile grid), f32 path: tight tolerance vs reference.
    B = 8
    x = jax.random.normal(k_x, (B, nx), jnp.float32)
    y = jax.block_until_ready(default_output_net_forward(x, packed_f32, ny))
    y_ref = reference_forward(x, params, ny)
    assert y.shape == (B,) + ny
    assert jnp.allclose(y, y_ref, atol=2e-5, rtol=2e-5), "mismatch vs reference (f32, B=8)"

    # Larger batch: multi-step parallel grid + batch padding, f32 path.
    B2 = 600
    x2 = jax.random.normal(k_x2, (B2, nx), jnp.float32)
    y2 = jax.block_until_ready(default_output_net_forward(x2, packed_f32, ny))
    y2_ref = reference_forward(x2, params, ny)
    assert y2.shape == (B2,) + ny
    assert jnp.allclose(y2, y2_ref, atol=2e-5, rtol=2e-5), "mismatch vs reference (f32, B=600)"

    # bf16 storage path (default for deployment): loose tolerance (f32 accumulate).
    y2_bf = jax.block_until_ready(default_output_net_forward(x2, packed_bf16, ny))
    assert y2_bf.shape == (B2,) + ny
    assert jnp.allclose(y2_bf, y2_ref, atol=5e-2, rtol=5e-2), "mismatch vs reference (bf16, B=600)"

    print("KERNEL_OK")
</pallas_src>

<mosaic_0001>
module attributes {stable_mosaic.version = 11 : i64} {
  func.func @_res_net_kernel(%arg0: i32, %arg1: memref<8x32xf32, #tpu.memory_space<vmem>>, %arg2: memref<32x192xf32, #tpu.memory_space<vmem>>, %arg3: memref<64x192xf32, #tpu.memory_space<vmem>>, %arg4: memref<2x192xf32, #tpu.memory_space<vmem>>, %arg5: memref<8x4xf32, #tpu.memory_space<vmem>>) attributes {dimension_semantics = [#tpu.dimension_semantics<parallel>], iteration_bounds = array<i64: 1>, scalar_prefetch = 0 : i64, scratch_operands = 0 : i64, tpu.core_type = #tpu.core_type<tc>, window_params = [{transform_indices = @transform_0, window_bounds = array<i64: 8, 32>}, {pipeline_mode = #tpu.pipeline_mode<synchronous>, transform_indices = @transform_1, window_bounds = array<i64: 32, 192>}, {pipeline_mode = #tpu.pipeline_mode<synchronous>, transform_indices = @transform_2, window_bounds = array<i64: 64, 192>}, {pipeline_mode = #tpu.pipeline_mode<synchronous>, transform_indices = @transform_3, window_bounds = array<i64: 2, 192>}, {transform_indices = @transform_4, window_bounds = array<i64: 8, 4>}]} {
    %c0 = arith.constant 0 : index
    %c0_0 = arith.constant 0 : index
    %0 = vector.load %arg1[%c0, %c0_0] : memref<8x32xf32, #tpu.memory_space<vmem>>, vector<8x32xf32>
    %c0_1 = arith.constant 0 : index
    %c0_2 = arith.constant 0 : index
    %1 = vector.load %arg2[%c0_1, %c0_2] : memref<32x192xf32, #tpu.memory_space<vmem>>, vector<32x192xf32>
    %cst = arith.constant dense<0.000000e+00> : vector<8x192xf32>
    %2 = tpu.matmul %0, %1, %cst {dimension_numbers = #tpu.dot_dimension_numbers<[1], [0], [0], [1], [0, 0, 1, 1], [], []>} : vector<8x32xf32>, vector<32x192xf32>, vector<8x192xf32> -> vector<8x192xf32>
    %c0_3 = arith.constant 0 : index
    %c0_4 = arith.constant 0 : index
    %3 = vector.load %arg4[%c0_3, %c0_4] : memref<2x192xf32, #tpu.memory_space<vmem>>, vector<1x192xf32>
    %4 = vector.broadcast %3 : vector<1x192xf32> to vector<8x192xf32>
    %5 = arith.addf %2, %4 : vector<8x192xf32>
    %6 = vector.extract_strided_slice %5 {offsets = [0, 0], sizes = [8, 128], strides = [1, 1]} : vector<8x192xf32> to vector<8x128xf32>
    %7 = vector.extract_strided_slice %5 {offsets = [0, 128], sizes = [8, 64], strides = [1, 1]} : vector<8x192xf32> to vector<8x64xf32>
    %8 = math.tanh %7 : vector<8x64xf32>
    %c0_5 = arith.constant 0 : index
    %c128 = arith.constant 128 : index
    %9 = vector.load %arg3[%c0_5, %c128] : memref<64x192xf32, #tpu.memory_space<vmem>>, vector<64x64xf32>
    %cst_6 = arith.constant dense<0.000000e+00> : vector<8x64xf32>
    %10 = tpu.matmul %8, %9, %cst_6 {dimension_numbers = #tpu.dot_dimension_numbers<[1], [0], [0], [1], [0, 0, 1, 1], [], []>} : vector<8x64xf32>, vector<64x64xf32>, vector<8x64xf32> -> vector<8x64xf32>
    %c1 = arith.constant 1 : index
    %c128_7 = arith.constant 128 : index
    %11 = vector.load %arg4[%c1, %c128_7] : memref<2x192xf32, #tpu.memory_space<vmem>>, vector<1x64xf32>
    %12 = vector.broadcast %11 : vector<1x64xf32> to vector<8x64xf32>
    %13 = arith.addf %10, %12 : vector<8x64xf32>
    %14 = math.tanh %13 : vector<8x64xf32>
    %c0_8 = arith.constant 0 : index
    %c0_9 = arith.constant 0 : index
    %15 = vector.load %arg3[%c0_8, %c0_9] : memref<64x192xf32, #tpu.memory_space<vmem>>, vector<64x128xf32>
    %cst_10 = arith.constant dense<0.000000e+00> : vector<8x128xf32>
    %16 = tpu.matmul %14, %15, %cst_10 {dimension_numbers = #tpu.dot_dimension_numbers<[1], [0], [0], [1], [0, 0, 1, 1], [], []>} : vector<8x64xf32>, vector<64x128xf32>, vector<8x128xf32> -> vector<8x128xf32>
    %17 = arith.addf %6, %16 : vector<8x128xf32>
    %18 = vector.extract_strided_slice %17 {offsets = [0, 0], sizes = [8, 4], strides = [1, 1]} : vector<8x128xf32> to vector<8x4xf32>
    %c0_11 = arith.constant 0 : index
    %c0_12 = arith.constant 0 : index
    %19 = vector.load %arg5[%c0_11, %c0_12] : memref<8x4xf32, #tpu.memory_space<vmem>>, vector<8x4xf32>
    tpu.vector_store %arg5[%c0_11, %c0_12], %18 {strides = array<i32>} : memref<8x4xf32, #tpu.memory_space<vmem>>, vector<8x4xf32>,
    return
  }
  func.func @transform_0(%arg0: i32) -> (i32, i32) {
    %c0_i32 = arith.constant 0 : i32
    %c0_i32_0 = arith.constant 0 : i32
    return %arg0, %c0_i32 : i32, i32
  }
  func.func @transform_1(%arg0: i32) -> (i32, i32) {
    %c0_i32 = arith.constant 0 : i32
    %c0_i32_0 = arith.constant 0 : i32
    %c0_i32_1 = arith.constant 0 : i32
    return %c0_i32, %c0_i32_0 : i32, i32
  }
  func.func @transform_2(%arg0: i32) -> (i32, i32) {
    %c0_i32 = arith.constant 0 : i32
    %c0_i32_0 = arith.constant 0 : i32
    %c0_i32_1 = arith.constant 0 : i32
    return %c0_i32, %c0_i32_0 : i32, i32
  }
  func.func @transform_3(%arg0: i32) -> (i32, i32) {
    %c0_i32 = arith.constant 0 : i32
    %c0_i32_0 = arith.constant 0 : i32
    %c0_i32_1 = arith.constant 0 : i32
    return %c0_i32, %c0_i32_0 : i32, i32
  }
  func.func @transform_4(%arg0: i32) -> (i32, i32) {
    %c0_i32 = arith.constant 0 : i32
    %c0_i32_0 = arith.constant 0 : i32
    return %arg0, %c0_i32 : i32, i32
  }
}

</mosaic_0001>

<bundles_post_ra>
// kernel: tpu_custom_call.1
= control target key start
LH: loop header
LB: loop body
LE: loop exit
PB: predicated region body
PF: predicated region fallthrough
CT: control target
= control target key end

     0   :  { %9 = vsyncpa [#allocation3], 0  ;;  %s379_s0 = inlined_call_operand.hbm [shape: f32[8,32], index: 0, kind: input, shape index: {}]   ;;  %s380_s1 = inlined_call_operand.hbm [shape: f32[32,192], index: 1, kind: input, shape index: {}]   ;;  %s381_s2 = inlined_call_operand.hbm [shape: f32[64,192], index: 2, kind: input, shape index: {}]   ;;  %s382_s3 = inlined_call_operand.hbm [shape: f32[2,192], index: 3, kind: input, shape index: {}]   ;;  %s383_s4 = inlined_call_operand.vmem [shape: f32[8,4], index: 4, kind: output, shape index: {}]  }
   0x1   :  { %10 = vsyncpa [#allocation5], 0  ;;  %s27_s17 = sshll.u32 %s380_s1, 4  ;;  %s28_s17 = int_to_ptr.hbm [resolvable:$true] %s27_s17 }
   0x2   :  { %11 = vsyncpa [#allocation8], 0  ;;  %s329_s18 = smov [#allocation4]   ;;  %s17_s22 = sshll.u32 %s379_s0, 4  ;;  %s18_s22 = int_to_ptr.hbm [resolvable:$true] %s17_s22 }
   0x3   :  { %s29_s19 = sshll.u32 %s329_s18, 4  ;;  %s330_s23 = smov 256   ;;  %s30_s19 = int_to_ptr.vmem [resolvable:$true] %s29_s19 }
   0x4   :  { %s331_s24 = smov 16   ;;  %s332_s25 = smov [#allocation2]  }
   0x5   :  { %35 = dma.hbm_to_vmem [thread:$0]  %s28_s17, 1024, %s30_s19, [#allocation5], %s330_s23, %s330_s23, %s331_s24  }
   0x6   :  { %s19_s26 = sshll.u32 %s332_s25, 4  ;;  %s40_s29 = sshll.u32 %s381_s2, 4  ;;  %s20_s26 = int_to_ptr.vmem [resolvable:$true] %s19_s26  ;;  %s41_s29 = int_to_ptr.hbm [resolvable:$true] %s40_s29 }
   0x7   :  { %22 = dma.hbm_to_vmem [thread:$0]  %s18_s22, 128, %s20_s26, [#allocation3]  }
   0x8   :  { %s54_s5 = sshll.u32 %s382_s3, 4  ;;  %s333_s6 = smov [#allocation6]   ;;  %s55_s5 = int_to_ptr.hbm [resolvable:$true] %s54_s5 }
   0x9   :  { %s42_s7 = sshll.u32 %s333_s6, 4  ;;  %s334_s0 = smov [#allocation7]   ;;  %s43_s7 = int_to_ptr.vmem [resolvable:$true] %s42_s7 }
   0xa   :  { %48 = dma.hbm_to_vmem [thread:$0]  %s41_s29, 2048, %s43_s7, [#allocation5], %s330_s23, %s330_s23, %s331_s24  }
   0xb   :  { %s56_s8 = sshll.u32 %s334_s0, 4  ;;  %s57_s8 = int_to_ptr.vmem [resolvable:$true] %s56_s8 }
   0xc   :  { %59 = dma.hbm_to_vmem [thread:$0]  %s55_s5, 64, %s57_s8, [#allocation8]  }
   0xd   :  { %323 = dma.done.wait [#allocation3], 128  }
   0xe   :  { %324 = vsyncadd [#allocation3], 4294967168 }
   0xf   :  { %325 = dma.done.wait [#allocation5], 3072  }
  0x10   :  { %326 = vsyncadd [#allocation5], 4294964224 }
  0x11   :  { %327 = dma.done.wait [#allocation8], 64  }
  0x12   :  { %328 = vsyncadd [#allocation8], 4294967232  ;;  %v84_v0 = vld [vmem:[#allocation4 + $0x38] sm:$0xff]  ;;  %v82_v1 = vld [vmem:[#allocation4 + $0x28] sm:$0xff]  ;;  %vm91_vm0 = vcmask 261120   ;;  %vm146_vm1 = vcmask 523264  }
  0x13   :  { %127 = vmatpush.msra.mxu1 %v84_v0  ;;  %v143_v2 = vld [vmem:[#allocation6 + $0x78] sm:$0xff]  ;;  %v142_v4 = vld [vmem:[#allocation6 + $0x68] sm:$0xff]  ;;  %v178_v13 = vld [vmem:[#allocation6 + $0x70] sm:$0xff]  ;;  %vm203_vm2 = vcmask 31744  }
  0x14   :  { %v80_v3 = vld [vmem:[#allocation4 + $0x18] sm:$0xff]  ;;  %158 = vmatpush.msra.mxu2 %v143_v2  ;;  %v78_v6 = vld [vmem:[#allocation4 + $0x8] sm:$0xff]  ;;  %v177_v14 = vld [vmem:[#allocation6 + $0x60] sm:$0xff]  ;;  %190 = vmatpush.msra.mxu3 %v178_v13 }
  0x15   :  { %128 = vmatpush.msra.mxu1 %v82_v1  ;;  %v141_v5 = vld [vmem:[#allocation6 + $0x58] sm:$0xff]  ;;  %v140_v8 = vld [vmem:[#allocation6 + $0x48] sm:$0xff]  ;;  %v176_v15 = vld [vmem:[#allocation6 + $0x50] sm:$0xff] }
  0x16   :  { %159 = vmatpush.msra.mxu2 %v142_v4  ;;  %v76_v7 = vld [vmem:[#allocation2] sm:$0xff]  ;;  %v138_v10 = vld [vmem:[#allocation6 + $0x28] sm:$0xff]  ;;  %191 = vmatpush.msra.mxu3 %v177_v14  ;;  %v85_v16 = vld [vmem:[#allocation7] ss:$2 sm:$0x3] }
  0x17   :  { %129 = vmatpush.msra.mxu1 %v80_v3  ;;  %v139_v9 = vld [vmem:[#allocation6 + $0x38] sm:$0xff]  ;;  %v136_v12 = vld [vmem:[#allocation6 + $0x8] sm:$0xff]  ;;  %v88_v17 = vperm.slane %v85_v16, 1  ;;  %v175_v21 = vld [vmem:[#allocation6 + $0x40] sm:$0xff]  ;;  %v87_v34 = vperm.slane %v85_v16, 0 }
  0x18   :  { %160 = vmatpush.msra.mxu2 %v141_v5  ;;  %v137_v11 = vld [vmem:[#allocation6 + $0x18] sm:$0xff]  ;;  %192 = vmatpush.msra.mxu3 %v176_v15  ;;  %v174_v22 = vld [vmem:[#allocation6 + $0x30] sm:$0xff]  ;;  %v173_v23 = vld [vmem:[#allocation6 + $0x20] sm:$0xff] }
  0x19   :  { %130 = vmatpush.msra.mxu1 %v78_v6  ;;  %v83_v24 = vld [vmem:[#allocation4 + $0x30] sm:$0xff]  ;;  %v81_v26 = vld [vmem:[#allocation4 + $0x20] sm:$0xff] }
  0x1a   :  { %213 = vmatmul.msk.f32.vlgmr.msra.gmra.mxu1 %vm91_vm0, %v76_v7  ;;  %161 = vmatpush.msra.mxu2 %v140_v8  ;;  %v172_v25 = vld [vmem:[#allocation6 + $0x10] sm:$0xff]  ;;  %v171_v27 = vld [vmem:[#allocation6] sm:$0xff] }
  0x1b   :  { %193 = vmatpush.msra.mxu3 %v175_v21  ;;  %107 = vmatpush.msra.mxu0 %v83_v24  ;;  %v79_v28 = vld [vmem:[#allocation4 + $0x10] sm:$0xff]  ;;  %v77_v29 = vld [vmem:[#allocation4] sm:$0xff] }
  0x1c   :  { %162 = vmatpush.msra.mxu2 %v139_v9  ;;  %v222_v30 = vld [vmem:[#allocation7 + $0x3] ss:$0 sm:$0xff] }
  0x1d   :  { %194 = vmatpush.msra.mxu3 %v174_v22  ;;  %108 = vmatpush.msra.mxu0 %v81_v26 }
  0x1e   :  { %163 = vmatpush.msra.mxu2 %v138_v10 }
  0x1f   :  { %195 = vmatpush.msra.mxu3 %v173_v23  ;;  %109 = vmatpush.msra.mxu0 %v79_v28 }
  0x20   :  { %164 = vmatpush.msra.mxu2 %v137_v11 }
  0x21   :  { %196 = vmatpush.msra.mxu3 %v172_v25  ;;  %110 = vmatpush.msra.mxu0 %v77_v29 }
  0x22   :  { %165 = vmatpush.msra.mxu2 %v136_v12  ;;  %212 = vmatmul.msk.f32.vlgmr.msra.gmra.mxu0 %vm91_vm0, %v76_v7 }
  0x23   :  { %197 = vmatpush.msra.mxu3 %v171_v27 }
  0x97   :  { %v132_v18 = vpop.f32.mrf.mxu1 }
  0x98   :  { %v133_v19 = vadd.f32 %v132_v18, %v88_v17 }
  0x9a   :  { %223 = vtanh.f32 %v133_v19 }
  0x9f   :  { %v112_v35 = vpop.f32.mrf.mxu0 }
  0xa0   :  { %v224_v20 = vpop.eup %223  ;;  %v113_v36 = vadd.f32 %v112_v35, %v87_v34 }
  0xa1   :  { %214 = vmatmul.msk.f32.vlgmr.msra.gmra.mxu2 %vm146_vm1, %v224_v20 }
 0x124   :  { %v167_v31 = vpop.f32.mrf.mxu2 }
 0x125   :  { %v168_v32 = vadd.f32 %v222_v30, %v167_v31 }
 0x127   :  { %225 = vtanh.f32 %v168_v32 }
 0x12d   :  { %v226_v33 = vpop.eup %225 }
 0x12e   :  { %215 = vmatmul.msk.f32.vlgmr.msra.gmra.mxu3 %vm146_vm1, %v226_v33 }
 0x1b1   :  { %v199_v37 = vpop.f32.mrf.mxu3 }
 0x1b2   :  { %v202_v38 = vadd.f32 %v199_v37, %v113_v36 }
 0x1b4   :  { %204 = vst.msk [vmem:[%s383_s4] sm:$0xff] %vm203_vm2, %v202_v38 }
 0x1b5   :  { %209 = vsyncpa [#allocation3], 1 }
 0x1b6   :  { %210 = vsyncpa [#allocation5], 1 }
 0x1b7   :  { %211 = vsyncpa [#allocation8], 1 }

</bundles_post_ra>
